<compile_context>
chip_gen: v5e
topology: v5e:2x2
jax: 0.10.0
libtpu: 0.0.40
codegen_flags: <defaults>
</compile_context>

<pallas_src>
import jax
import jax.numpy as jnp
from jax.experimental import pallas as pl
from jax.experimental.pallas import tpu as pltpu

LANE = 128        # TPU lane width (last dim of a vreg)
SUBLANE = 8       # TPU sublane width (second-to-last dim of a vreg)

TILE_B_CAP = 1024     # max rows per grid step (amortizes ~0.35 us/step overhead)
MIN_SPLIT_TILE = 128  # only split into >=2 tiles if each tile stays >= this


def _round_up(x, m):
    return ((x + m - 1) // m) * m


def _choose_tile_b(batch):
    """Sublane-aligned batch tile: big enough to amortize grid-step overhead,
    split in two for moderate batches so both v7x TensorCores are used."""
    b_aligned = _round_up(batch, SUBLANE)
    if b_aligned > TILE_B_CAP:
        return TILE_B_CAP
    half = _round_up(pl.cdiv(b_aligned, 2), SUBLANE)
    return half if half >= MIN_SPLIT_TILE else b_aligned


def actor_kernel(x_ref, w1_ref, b1_ref, w2_ref, b2_ref, w3_ref, b3_ref, o_ref):
    hi = jax.lax.Precision.HIGHEST
    # fc1 + ReLU  (MXU matmul, true-f32 passes, f32 accumulation)
    h1 = jnp.dot(x_ref[...], w1_ref[...], precision=hi,
                 preferred_element_type=jnp.float32)
    h1 = jnp.maximum(h1 + b1_ref[...], 0.0)
    # fc2 + ReLU
    h2 = jnp.dot(h1, w2_ref[...], precision=hi,
                 preferred_element_type=jnp.float32)
    h2 = jnp.maximum(h2 + b2_ref[...], 0.0)
    # fc3 + tanh : compute on the 128-lane-padded weights (full vregs on the
    # MXU/VPU/EUP), but store only the real action lanes -> minimal HBM
    # writeback (masked vst on a tiny lane count is negligible here).
    h3 = jnp.dot(h2, w3_ref[...], precision=hi,
                 preferred_element_type=jnp.float32)
    y = jnp.tanh(h3 + b3_ref[...])
    o_ref[...] = y[:, : o_ref.shape[-1]].astype(o_ref.dtype)


def actor_forward(x, params, action_size):
    """x: (B, state_size) f32.  params: dict with transposed weights
    (fc3 additionally lane-padded for the MXU epilogue)."""
    w1, b1 = params["w1"], params["b1"]
    w2, b2 = params["w2"], params["b2"]
    w3p, b3p = params["w3_padded"], params["b3_padded"]

    B, state_size = x.shape
    tile_b = _choose_tile_b(B)
    # Ragged last tile (B not a multiple of tile_b) is handled by Pallas:
    # OOB input rows are garbage that only affects OOB output rows, whose
    # stores are masked -- no host-side padding copy of x.
    grid = (pl.cdiv(B, tile_b),)

    # Weights/biases: same block index every grid step -> stay VMEM-resident,
    # no per-tile re-DMA of parameters (total params ~100 KiB).
    resident = lambda a: pl.BlockSpec(a.shape, lambda i: (0, 0))

    out = pl.pallas_call(
        actor_kernel,
        out_shape=jax.ShapeDtypeStruct((B, action_size), jnp.float32),
        grid=grid,
        in_specs=[
            pl.BlockSpec((tile_b, state_size), lambda i: (i, 0)),  # x blocked on batch
            resident(w1), resident(b1),
            resident(w2), resident(b2),
            resident(w3p), resident(b3p),
        ],
        out_specs=pl.BlockSpec((tile_b, action_size), lambda i: (i, 0)),
        compiler_params=pltpu.CompilerParams(
            dimension_semantics=("parallel",)),
    )(x, w1, b1, w2, b2, w3p, b3p)
    return out


def init_actor_params(key, state_size, action_size, fc1_units=128, fc2_units=128):
    """Mirrors the PyTorch module's init: reset_parameters() sets ALL three
    weight matrices to U(-0.003, 0.003); biases keep the nn.Linear default
    U(-1/sqrt(fan_in), +1/sqrt(fan_in)).  Weights stored transposed (in, out);
    fc3 weight/bias additionally pre-padded to 128 output lanes (compute-side
    padding only -- the stored output keeps the logical action_size width)."""
    ks = jax.random.split(key, 6)

    def w_init(k, fan_in, fan_out):
        return jax.random.uniform(k, (fan_in, fan_out), jnp.float32, -0.003, 0.003)

    def b_init(k, fan_in, fan_out):
        bound = 1.0 / jnp.sqrt(jnp.float32(fan_in))
        return jax.random.uniform(k, (1, fan_out), jnp.float32, -bound, bound)

    w3 = w_init(ks[4], fc2_units, action_size)
    b3 = b_init(ks[5], fc2_units, action_size)

    out_pad = _round_up(action_size, LANE)
    w3_padded = jnp.pad(w3, ((0, 0), (0, out_pad - action_size)))
    b3_padded = jnp.pad(b3, ((0, 0), (0, out_pad - action_size)))

    return {
        "w1": w_init(ks[0], state_size, fc1_units),
        "b1": b_init(ks[1], state_size, fc1_units),
        "w2": w_init(ks[2], fc1_units, fc2_units),
        "b2": b_init(ks[3], fc1_units, fc2_units),
        "w3": w3,
        "b3": b3,
        "w3_padded": w3_padded,
        "b3_padded": b3_padded,
    }


def actor_reference(x, p):
    hi = jax.lax.Precision.HIGHEST
    h1 = jnp.maximum(jnp.dot(x, p["w1"], precision=hi) + p["b1"], 0.0)
    h2 = jnp.maximum(jnp.dot(h1, p["w2"], precision=hi) + p["b2"], 0.0)
    return jnp.tanh(jnp.dot(h2, p["w3"], precision=hi) + p["b3"])


if __name__ == "__main__":
    key = jax.random.PRNGKey(0)
    k_x, k_p = jax.random.split(key)

    batch, state_size, action_size = 8, 32, 4
    params = init_actor_params(k_p, state_size, action_size)

    # Small per-step-inference shape.
    x = jax.random.normal(k_x, (batch, state_size), jnp.float32)
    y = actor_forward(x, params, action_size)
    jax.block_until_ready(y)
    y_ref = actor_reference(x, params)
    assert y.shape == (batch, action_size)
    assert jnp.allclose(y, y_ref, atol=1e-5, rtol=1e-5)

    # Larger, non-multiple batch: exercises the multi-tile "parallel" grid and
    # the ragged last tile (no host-side padding copy of x any more).
    xb = jax.random.normal(k_x, (300, state_size), jnp.float32)
    yb = actor_forward(xb, params, action_size)
    jax.block_until_ready(yb)
    assert yb.shape == (300, action_size)
    assert jnp.allclose(yb, actor_reference(xb, params), atol=1e-5, rtol=1e-5)

    print("KERNEL_OK")
</pallas_src>

<mosaic_0001>
module attributes {stable_mosaic.version = 11 : i64} {
  func.func @actor_kernel(%arg0: i32, %arg1: memref<8x32xf32, #tpu.memory_space<vmem>>, %arg2: memref<32x128xf32, #tpu.memory_space<vmem>>, %arg3: memref<1x128xf32, #tpu.memory_space<vmem>>, %arg4: memref<128x128xf32, #tpu.memory_space<vmem>>, %arg5: memref<1x128xf32, #tpu.memory_space<vmem>>, %arg6: memref<128x128xf32, #tpu.memory_space<vmem>>, %arg7: memref<1x128xf32, #tpu.memory_space<vmem>>, %arg8: memref<8x4xf32, #tpu.memory_space<vmem>>) attributes {dimension_semantics = [#tpu.dimension_semantics<parallel>], iteration_bounds = array<i64: 1>, scalar_prefetch = 0 : i64, scratch_operands = 0 : i64, tpu.core_type = #tpu.core_type<tc>, window_params = [{transform_indices = @transform_0, window_bounds = array<i64: 8, 32>}, {pipeline_mode = #tpu.pipeline_mode<synchronous>, transform_indices = @transform_1, window_bounds = array<i64: 32, 128>}, {pipeline_mode = #tpu.pipeline_mode<synchronous>, transform_indices = @transform_2, window_bounds = array<i64: 1, 128>}, {pipeline_mode = #tpu.pipeline_mode<synchronous>, transform_indices = @transform_3, window_bounds = array<i64: 128, 128>}, {pipeline_mode = #tpu.pipeline_mode<synchronous>, transform_indices = @transform_4, window_bounds = array<i64: 1, 128>}, {pipeline_mode = #tpu.pipeline_mode<synchronous>, transform_indices = @transform_5, window_bounds = array<i64: 128, 128>}, {pipeline_mode = #tpu.pipeline_mode<synchronous>, transform_indices = @transform_6, window_bounds = array<i64: 1, 128>}, {transform_indices = @transform_7, window_bounds = array<i64: 8, 4>}]} {
    %c0 = arith.constant 0 : index
    %c0_0 = arith.constant 0 : index
    %0 = vector.load %arg1[%c0, %c0_0] : memref<8x32xf32, #tpu.memory_space<vmem>>, vector<8x32xf32>
    %c0_1 = arith.constant 0 : index
    %c0_2 = arith.constant 0 : index
    %1 = vector.load %arg2[%c0_1, %c0_2] : memref<32x128xf32, #tpu.memory_space<vmem>>, vector<32x128xf32>
    %cst = arith.constant dense<0.000000e+00> : vector<8x128xf32>
    %2 = tpu.matmul %0, %1, %cst {dimension_numbers = #tpu.dot_dimension_numbers<[1], [0], [0], [1], [0, 0, 1, 1], [], []>, precision = #tpu.contract_precision<fp32>} : vector<8x32xf32>, vector<32x128xf32>, vector<8x128xf32> -> vector<8x128xf32>
    %c0_3 = arith.constant 0 : index
    %c0_4 = arith.constant 0 : index
    %3 = vector.load %arg3[%c0_3, %c0_4] : memref<1x128xf32, #tpu.memory_space<vmem>>, vector<1x128xf32>
    %4 = vector.broadcast %3 : vector<1x128xf32> to vector<8x128xf32>
    %5 = arith.addf %2, %4 : vector<8x128xf32>
    %cst_5 = arith.constant 0.000000e+00 : f32
    %6 = vector.broadcast %cst_5 : f32 to vector<8x128xf32>
    %7 = arith.maximumf %5, %6 : vector<8x128xf32>
    %c0_6 = arith.constant 0 : index
    %c0_7 = arith.constant 0 : index
    %8 = vector.load %arg4[%c0_6, %c0_7] : memref<128x128xf32, #tpu.memory_space<vmem>>, vector<128x128xf32>
    %cst_8 = arith.constant dense<0.000000e+00> : vector<8x128xf32>
    %9 = tpu.matmul %7, %8, %cst_8 {dimension_numbers = #tpu.dot_dimension_numbers<[1], [0], [0], [1], [0, 0, 1, 1], [], []>, precision = #tpu.contract_precision<fp32>} : vector<8x128xf32>, vector<128x128xf32>, vector<8x128xf32> -> vector<8x128xf32>
    %c0_9 = arith.constant 0 : index
    %c0_10 = arith.constant 0 : index
    %10 = vector.load %arg5[%c0_9, %c0_10] : memref<1x128xf32, #tpu.memory_space<vmem>>, vector<1x128xf32>
    %11 = vector.broadcast %10 : vector<1x128xf32> to vector<8x128xf32>
    %12 = arith.addf %9, %11 : vector<8x128xf32>
    %cst_11 = arith.constant 0.000000e+00 : f32
    %13 = vector.broadcast %cst_11 : f32 to vector<8x128xf32>
    %14 = arith.maximumf %12, %13 : vector<8x128xf32>
    %c0_12 = arith.constant 0 : index
    %c0_13 = arith.constant 0 : index
    %15 = vector.load %arg6[%c0_12, %c0_13] : memref<128x128xf32, #tpu.memory_space<vmem>>, vector<128x128xf32>
    %cst_14 = arith.constant dense<0.000000e+00> : vector<8x128xf32>
    %16 = tpu.matmul %14, %15, %cst_14 {dimension_numbers = #tpu.dot_dimension_numbers<[1], [0], [0], [1], [0, 0, 1, 1], [], []>, precision = #tpu.contract_precision<fp32>} : vector<8x128xf32>, vector<128x128xf32>, vector<8x128xf32> -> vector<8x128xf32>
    %c0_15 = arith.constant 0 : index
    %c0_16 = arith.constant 0 : index
    %17 = vector.load %arg7[%c0_15, %c0_16] : memref<1x128xf32, #tpu.memory_space<vmem>>, vector<1x128xf32>
    %18 = vector.broadcast %17 : vector<1x128xf32> to vector<8x128xf32>
    %19 = arith.addf %16, %18 : vector<8x128xf32>
    %20 = math.tanh %19 : vector<8x128xf32>
    %21 = vector.extract_strided_slice %20 {offsets = [0, 0], sizes = [8, 4], strides = [1, 1]} : vector<8x128xf32> to vector<8x4xf32>
    %c0_17 = arith.constant 0 : index
    %c0_18 = arith.constant 0 : index
    %22 = vector.load %arg8[%c0_17, %c0_18] : memref<8x4xf32, #tpu.memory_space<vmem>>, vector<8x4xf32>
    tpu.vector_store %arg8[%c0_17, %c0_18], %21 {strides = array<i32>} : memref<8x4xf32, #tpu.memory_space<vmem>>, vector<8x4xf32>,
    return
  }
  func.func @transform_0(%arg0: i32) -> (i32, i32) {
    %c0_i32 = arith.constant 0 : i32
    %c0_i32_0 = arith.constant 0 : i32
    return %arg0, %c0_i32 : i32, i32
  }
  func.func @transform_1(%arg0: i32) -> (i32, i32) {
    %c0_i32 = arith.constant 0 : i32
    %c0_i32_0 = arith.constant 0 : i32
    %c0_i32_1 = arith.constant 0 : i32
    return %c0_i32, %c0_i32_0 : i32, i32
  }
  func.func @transform_2(%arg0: i32) -> (i32, i32) {
    %c0_i32 = arith.constant 0 : i32
    %c0_i32_0 = arith.constant 0 : i32
    %c0_i32_1 = arith.constant 0 : i32
    return %c0_i32, %c0_i32_0 : i32, i32
  }
  func.func @transform_3(%arg0: i32) -> (i32, i32) {
    %c0_i32 = arith.constant 0 : i32
    %c0_i32_0 = arith.constant 0 : i32
    %c0_i32_1 = arith.constant 0 : i32
    return %c0_i32, %c0_i32_0 : i32, i32
  }
  func.func @transform_4(%arg0: i32) -> (i32, i32) {
    %c0_i32 = arith.constant 0 : i32
    %c0_i32_0 = arith.constant 0 : i32
    %c0_i32_1 = arith.constant 0 : i32
    return %c0_i32, %c0_i32_0 : i32, i32
  }
  func.func @transform_5(%arg0: i32) -> (i32, i32) {
    %c0_i32 = arith.constant 0 : i32
    %c0_i32_0 = arith.constant 0 : i32
    %c0_i32_1 = arith.constant 0 : i32
    return %c0_i32, %c0_i32_0 : i32, i32
  }
  func.func @transform_6(%arg0: i32) -> (i32, i32) {
    %c0_i32 = arith.constant 0 : i32
    %c0_i32_0 = arith.constant 0 : i32
    %c0_i32_1 = arith.constant 0 : i32
    return %c0_i32, %c0_i32_0 : i32, i32
  }
  func.func @transform_7(%arg0: i32) -> (i32, i32) {
    %c0_i32 = arith.constant 0 : i32
    %c0_i32_0 = arith.constant 0 : i32
    return %arg0, %c0_i32 : i32, i32
  }
}

</mosaic_0001>

<bundles_post_ra>
// kernel: tpu_custom_call.1
= control target key start
LH: loop header
LB: loop body
LE: loop exit
PB: predicated region body
PF: predicated region fallthrough
CT: control target
= control target key end

     0   :  { %12 = vsyncpa [#allocation3], 0  ;;  %s1690_s0 = inlined_call_operand.hbm [shape: f32[8,32], index: 0, kind: input, shape index: {}]   ;;  %s1691_s1 = inlined_call_operand.hbm [shape: f32[32,128], index: 1, kind: input, shape index: {}]   ;;  %s1692_s2 = inlined_call_operand.vmem [shape: f32[1,128], index: 2, kind: input, shape index: {}]   ;;  %s1693_s3 = inlined_call_operand.hbm [shape: f32[128,128], index: 3, kind: input, shape index: {}]   ;;  %s1694_s4 = inlined_call_operand.vmem [shape: f32[1,128], index: 4, kind: input, shape index: {}]   ;;  %s1695_s5 = inlined_call_operand.hbm [shape: f32[128,128], index: 5, kind: input, shape index: {}]   ;;  %s1696_s6 = inlined_call_operand.vmem [shape: f32[1,128], index: 6, kind: input, shape index: {}]   ;;  %s1697_s7 = inlined_call_operand.vmem [shape: f32[8,4], index: 7, kind: output, shape index: {}]  }
   0x1   :  { %13 = vsyncpa [#allocation5], 0  ;;  %s30_s26 = sshll.u32 %s1691_s1, 4  ;;  %s31_s26 = int_to_ptr.hbm [resolvable:$true] %s30_s26 }
   0x2   :  { %14 = vsyncpa [#allocation8], 0  ;;  %s1132_s27 = smov [#allocation4]   ;;  %s20_s8 = sshll.u32 %s1690_s0, 4  ;;  %s21_s8 = int_to_ptr.hbm [resolvable:$true] %s20_s8 }
   0x3   :  { %s32_s28 = sshll.u32 %s1132_s27, 4  ;;  %s1133_s9 = smov 128   ;;  %s33_s28 = int_to_ptr.vmem [resolvable:$true] %s32_s28 }
   0x4   :  { %s1134_s10 = smov 8   ;;  %s1135_s11 = smov [#allocation2]  }
   0x5   :  { %38 = dma.hbm_to_vmem [thread:$0]  %s31_s26, 512, %s33_s28, [#allocation5], %s1133_s9, %s1133_s9, %s1134_s10  }
   0x6   :  { %s22_s12 = sshll.u32 %s1135_s11, 4  ;;  %s45_s15 = sshll.u32 %s1693_s3, 4  ;;  %s23_s12 = int_to_ptr.vmem [resolvable:$true] %s22_s12  ;;  %s46_s15 = int_to_ptr.hbm [resolvable:$true] %s45_s15 }
   0x7   :  { %25 = dma.hbm_to_vmem [thread:$0]  %s21_s8, 128, %s23_s12, [#allocation3]  }
   0x8   :  { %s60_s17 = sshll.u32 %s1695_s5, 4  ;;  %s1136_s18 = smov [#allocation6]   ;;  %s61_s17 = int_to_ptr.hbm [resolvable:$true] %s60_s17 }
   0x9   :  { %s47_s19 = sshll.u32 %s1136_s18, 4  ;;  %s1137_s0 = smov [#allocation7]   ;;  %s48_s19 = int_to_ptr.vmem [resolvable:$true] %s47_s19 }
   0xa   :  { %53 = dma.hbm_to_vmem [thread:$0]  %s46_s15, 2048, %s48_s19, [#allocation5], %s1133_s9, %s1133_s9, %s1134_s10  }
   0xb   :  { %s62_s20 = sshll.u32 %s1137_s0, 4  ;;  %s63_s20 = int_to_ptr.vmem [resolvable:$true] %s62_s20 }
   0xc   :  { %68 = dma.hbm_to_vmem [thread:$0]  %s61_s17, 2048, %s63_s20, [#allocation8], %s1133_s9, %s1133_s9, %s1134_s10  }
   0xd   :  { %1126 = dma.done.wait [#allocation3], 128  }
   0xe   :  { %1127 = vsyncadd [#allocation3], 4294967168 }
   0xf   :  { %1128 = dma.done.wait [#allocation5], 2560  }
  0x10   :  { %1129 = vsyncadd [#allocation5], 4294964736 }
  0x11   :  { %1130 = dma.done.wait [#allocation8], 2048  }
  0x12   :  { %1131 = vsyncadd [#allocation8], 4294965248  ;;  %vm96_vm0 = vcmask 261120   ;;  %v91_v0 = vld [vmem:[#allocation4 + $0x18] sm:$0xff]  ;;  %v90_v1 = vld [vmem:[#allocation4 + $0x10] sm:$0xff]  ;;  %vm1010_vm1 = vcmask 31744  }
  0x13   :  { %v89_v2 = vld [vmem:[#allocation4 + $0x8] sm:$0xff]  ;;  %v1190_v3 = vand.u32 4294901760, %v91_v0  ;;  %v1192_v4 = vand.u32 4294901760, %v90_v1  ;;  %v88_v6 = vld [vmem:[#allocation4] sm:$0xff]  ;;  %v87_v7 = vld [vmem:[#allocation2] sm:$0xff] }
  0x14   :  { %v1194_v5 = vand.u32 4294901760, %v89_v2  ;;  %v301_v8 = vld [vmem:[#allocation6 + $0x78] sm:$0xff]  ;;  %v1196_v9 = vand.u32 4294901760, %v88_v6  ;;  %v98_v10 = vsel %vm96_vm0, %v87_v7, 0  ;;  %v300_v12 = vld [vmem:[#allocation6 + $0x70] sm:$0xff]  ;;  %v299_v13 = vld [vmem:[#allocation6 + $0x68] sm:$0xff] }
  0x15   :  { %v1198_v11 = vand.u32 4294901760, %v301_v8  ;;  %v142_v14 = vsub.f32 %v91_v0, %v1190_v3  ;;  %113 = vmatpush.msra.mxu0 %v1190_v3  ;;  %v1203_v15 = vsub.f32 %v90_v1, %v1192_v4  ;;  %213 = vmatpush.msra.mxu3 %v1190_v3  ;;  %v1209_v17 = vand.u32 4294901760, %v98_v10  ;;  %v298_v38 = vld [vmem:[#allocation6 + $0x60] sm:$0xff]  ;;  %v297_v39 = vld [vmem:[#allocation6 + $0x58] sm:$0xff]  ;;  %v296_v40 = vld [vmem:[#allocation6 + $0x50] sm:$0xff] }
  0x16   :  { %v1207_v16 = vsub.f32 %v89_v2, %v1194_v5  ;;  %v1212_v18 = vsub.f32 %v88_v6, %v1196_v9  ;;  %v1217_v20 = vand.u32 4294901760, %v300_v12  ;;  %v1219_v21 = vand.u32 4294901760, %v299_v13  ;;  %v295_v44 = vld [vmem:[#allocation6 + $0x48] sm:$0xff]  ;;  %v294_v45 = vld [vmem:[#allocation6 + $0x40] sm:$0xff]  ;;  %v293_v50 = vld [vmem:[#allocation6 + $0x38] sm:$0xff] }
  0x17   :  { %v1215_v19 = vsub.f32 %v301_v8, %v1198_v11  ;;  %184 = vmatpush.msra.mxu2 %v142_v14  ;;  %115 = vmatpush.msra.mxu0 %v1192_v4  ;;  %v143_v22 = vand.u32 4294901760, %v142_v14  ;;  %v149_v23 = vand.u32 4294901760, %v1203_v15  ;;  %v121_v24 = vsub.f32 %v98_v10, %v1209_v17  ;;  %v292_v55 = vld [vmem:[#allocation6 + $0x30] sm:$0xff]  ;;  %v291_v60 = vld [vmem:[#allocation6 + $0x28] sm:$0xff] }
  0x18   :  { %v155_v25 = vand.u32 4294901760, %v1207_v16  ;;  %215 = vmatpush.msra.mxu3 %v1192_v4  ;;  %v161_v26 = vand.u32 4294901760, %v1212_v18  ;;  %v1229_v28 = vsub.f32 %v300_v12, %v1217_v20  ;;  %v1232_v29 = vsub.f32 %v299_v13, %v1219_v21 }
  0x19   :  { %v349_v27 = vand.u32 4294901760, %v1215_v19  ;;  %187 = vmatpush.msra.mxu2 %v1203_v15  ;;  %v144_v30 = vsub.f32 %v142_v14, %v143_v22  ;;  %117 = vmatpush.msra.mxu0 %v1194_v5  ;;  %v150_v31 = vsub.f32 %v1203_v15, %v149_v23  ;;  %v122_v33 = vand.u32 4294901760, %v121_v24 }
  0x1a   :  { %v156_v32 = vsub.f32 %v1207_v16, %v155_v25  ;;  %217 = vmatpush.msra.mxu3 %v1194_v5  ;;  %v162_v34 = vsub.f32 %v1212_v18, %v161_v26  ;;  %v355_v36 = vand.u32 4294901760, %v1229_v28  ;;  %v361_v37 = vand.u32 4294901760, %v1232_v29 }
  0x1b   :  { %v350_v35 = vsub.f32 %v1215_v19, %v349_v27  ;;  %v145_v41 = vand.u32 4294901760, %v144_v30  ;;  %190 = vmatpush.msra.mxu2 %v1207_v16  ;;  %v151_v42 = vand.u32 4294901760, %v150_v31  ;;  %119 = vmatpush.msra.mxu0 %v1196_v9  ;;  %v123_v43 = vsub.f32 %v121_v24, %v122_v33  ;;  %v290_v30 = vld [vmem:[#allocation6 + $0x20] sm:$0xff]  ;;  %v289_v31 = vld [vmem:[#allocation6 + $0x18] sm:$0xff] }
  0x1c   :  { %v157_v46 = vand.u32 4294901760, %v156_v32  ;;  %219 = vmatpush.msra.mxu3 %v1196_v9  ;;  %v356_v48 = vsub.f32 %v1229_v28, %v355_v36  ;;  %v362_v49 = vsub.f32 %v1232_v29, %v361_v37  ;;  %v1259_v52 = vand.u32 4294901760, %v298_v38 }
  0x1d   :  { %242 = vmatpush.msrb.mxu0 %v143_v22  ;;  %v351_v47 = vand.u32 4294901760, %v350_v35  ;;  %146 = vmatpush.msra.mxu1 %v145_v41  ;;  %v124_v51 = vand.u32 4294901760, %v123_v43  ;;  %v1261_v53 = vand.u32 4294901760, %v297_v39  ;;  %v1263_v54 = vand.u32 4294901760, %v296_v40 }
  0x1e   :  { %193 = vmatpush.msra.mxu2 %v1212_v18  ;;  %223 = vmatmul.f32.vlgmr.msra.gmra.mxu3 %v122_v33  ;;  %v163_v56 = vand.u32 4294901760, %v162_v34  ;;  %v357_v57 = vand.u32 4294901760, %v356_v48  ;;  %v1265_v58 = vand.u32 4294901760, %v295_v44  ;;  %v1267_v59 = vand.u32 4294901760, %v294_v45  ;;  %v288_v34 = vld [vmem:[#allocation6 + $0x10] sm:$0xff] }
  0x1f   :  { %196 = vmatmul.f32.vlgmr.msra.gmra.mxu2 %v121_v24  ;;  %152 = vmatpush.msra.mxu1 %v151_v42  ;;  %v1270_v61 = vsub.f32 %v298_v38, %v1259_v52  ;;  %v1273_v62 = vsub.f32 %v297_v39, %v1261_v53  ;;  %v1276_v63 = vsub.f32 %v296_v40, %v1263_v54  ;;  %v1278_v0 = vand.u32 4294901760, %v293_v50  ;;  %v287_v40 = vld [vmem:[#allocation6 + $0x8] sm:$0xff] }
  0x20   :  { %125 = vmatmul.f32.vlgmr.msra.gmra.mxu0 %v124_v51  ;;  %352 = vmatpush.msrb.mxu3 %v351_v47  ;;  %v363_v1 = vand.u32 4294901760, %v362_v49  ;;  %v1281_v2 = vsub.f32 %v295_v44, %v1265_v58  ;;  %v1284_v6 = vsub.f32 %v294_v45, %v1267_v59  ;;  %v1286_v7 = vand.u32 4294901760, %v292_v55  ;;  %v286_v45 = vld [vmem:[#allocation6] sm:$0xff] }
  0x21   :  { %246 = vmatpush.msrb.mxu0 %v149_v23  ;;  %158 = vmatpush.msra.mxu1 %v157_v46  ;;  %v367_v8 = vand.u32 4294901760, %v1270_v61  ;;  %v373_v10 = vand.u32 4294901760, %v1273_v62  ;;  %v379_v12 = vand.u32 4294901760, %v1276_v63  ;;  %v1292_v13 = vand.u32 4294901760, %v291_v60 }
  0x22   :  { %307 = vmatpush.msrb.mxu2 %v1198_v11  ;;  %358 = vmatpush.msrb.mxu3 %v357_v57  ;;  %v385_v14 = vand.u32 4294901760, %v1281_v2  ;;  %v1298_v15 = vsub.f32 %v293_v50, %v1278_v0  ;;  %v391_v16 = vand.u32 4294901760, %v1284_v6  ;;  %v1332_v38 = vand.u32 4294901760, %v290_v30 }
  0x23   :  { %250 = vmatpush.msrb.mxu0 %v155_v25  ;;  %164 = vmatpush.msra.mxu1 %v163_v56  ;;  %v368_v22 = vsub.f32 %v1270_v61, %v367_v8  ;;  %v374_v23 = vsub.f32 %v1273_v62, %v373_v10  ;;  %v380_v24 = vsub.f32 %v1276_v63, %v379_v12  ;;  %v1334_v39 = vand.u32 4294901760, %v289_v31 }
  0x24   :  { %309 = vmatpush.msrb.mxu2 %v1217_v20  ;;  %166 = vmatmul.f32.vlgmr.msra.gmra.mxu1 %v1209_v17  ;;  %v1315_v25 = vsub.f32 %v292_v55, %v1286_v7  ;;  %v1319_v33 = vsub.f32 %v291_v60, %v1292_v13  ;;  %v386_v18 = vsub.f32 %v1281_v2, %v385_v14  ;;  %v1338_v43 = vand.u32 4294901760, %v288_v34 }
  0x25   :  { %254 = vmatpush.msrb.mxu0 %v161_v26  ;;  %273 = vmatpush.msrb.mxu1 %v1190_v3  ;;  %v369_v32 = vand.u32 4294901760, %v368_v22  ;;  %v375_v35 = vand.u32 4294901760, %v374_v23  ;;  %v397_v26 = vand.u32 4294901760, %v1298_v15  ;;  %v392_v3 = vsub.f32 %v1284_v6, %v391_v16 }
  0x26   :  { %364 = vmatpush.msrb.mxu3 %v363_v1  ;;  %311 = vmatpush.msrb.mxu2 %v1219_v21  ;;  %v381_v41 = vand.u32 4294901760, %v380_v24  ;;  %v403_v42 = vand.u32 4294901760, %v1315_v25  ;;  %v1343_v44 = vsub.f32 %v290_v30, %v1332_v38  ;;  %v387_v46 = vand.u32 4294901760, %v386_v18 }
  0x27   :  { %450 = vmatpush.msra.mxu0 %v1215_v19  ;;  %275 = vmatpush.msrb.mxu1 %v1192_v4  ;;  %v409_v4 = vand.u32 4294901760, %v1319_v33  ;;  %v398_v47 = vsub.f32 %v1298_v15, %v397_v26  ;;  %v1351_v48 = vsub.f32 %v289_v31, %v1334_v39  ;;  %v393_v49 = vand.u32 4294901760, %v392_v3 }
  0x28   :  { %256 = vmatmul.f32.vlgmr.msrb.gmra.mxu0 %v1209_v17  ;;  %370 = vmatpush.msrb.mxu3 %v369_v32  ;;  %v404_v50 = vsub.f32 %v1315_v25, %v403_v42  ;;  %v415_v51 = vand.u32 4294901760, %v1343_v44  ;;  %v1363_v55 = vsub.f32 %v288_v34, %v1338_v43  ;;  %v1365_v56 = vand.u32 4294901760, %v286_v45 }
  0x29   :  { %313 = vmatpush.msrb.mxu2 %v1259_v52  ;;  %277 = vmatpush.msrb.mxu1 %v1194_v5  ;;  %v1353_v5 = vand.u32 4294901760, %v287_v40  ;;  %v421_v57 = vand.u32 4294901760, %v1351_v48 }
  0x2a   :  { %453 = vmatpush.msra.mxu0 %v1229_v28  ;;  %376 = vmatpush.msrb.mxu3 %v375_v35  ;;  %v405_v1 = vand.u32 4294901760, %v404_v50  ;;  %v416_v22 = vsub.f32 %v1343_v44, %v415_v51  ;;  %v427_v23 = vand.u32 4294901760, %v1363_v55  ;;  %v1384_v24 = vsub.f32 %v286_v45, %v1365_v56  ;;  %v661_v28 = vld [vmem:[#allocation7 + $0x68] sm:$0xff] }
  0x2b   :  { %315 = vmatpush.msrb.mxu2 %v1261_v53  ;;  %279 = vmatpush.msrb.mxu1 %v1196_v9  ;;  %v399_v9 = vand.u32 4294901760, %v398_v47  ;;  %v1374_v60 = vsub.f32 %v287_v40, %v1353_v5  ;;  %v422_v31 = vsub.f32 %v1351_v48, %v421_v57 }
  0x2c   :  { %456 = vmatpush.msra.mxu0 %v1232_v29  ;;  %281 = vmatmul.f32.vlgmr.msrb.gmra.mxu1 %v1209_v17  ;;  %v410_v17 = vsub.f32 %v1319_v33, %v409_v4  ;;  %v417_v34 = vand.u32 4294901760, %v416_v22  ;;  %v428_v35 = vsub.f32 %v1363_v55, %v427_v23  ;;  %v439_v18 = vand.u32 4294901760, %v1384_v24 }
  0x2d   :  { %382 = vmatpush.msrb.mxu3 %v381_v41  ;;  %317 = vmatpush.msrb.mxu2 %v1263_v54  ;;  %v433_v32 = vand.u32 4294901760, %v1374_v60  ;;  %v423_v3 = vand.u32 4294901760, %v422_v31 }
  0x2e   :  { %503 = vmatpush.msra.mxu1 %v1198_v11  ;;  %459 = vmatpush.msra.mxu0 %v1270_v61  ;;  %v411_v30 = vand.u32 4294901760, %v410_v17  ;;  %v429_v41 = vand.u32 4294901760, %v428_v35  ;;  %v440_v45 = vsub.f32 %v1384_v24, %v439_v18 }
  0x2f   :  { %388 = vmatpush.msrb.mxu3 %v387_v46  ;;  %319 = vmatpush.msrb.mxu2 %v1265_v58  ;;  %v434_v40 = vsub.f32 %v1374_v60, %v433_v32 }
  0x30   :  { %505 = vmatpush.msra.mxu1 %v1217_v20  ;;  %462 = vmatpush.msra.mxu0 %v1273_v62  ;;  %v441_v47 = vand.u32 4294901760, %v440_v45  ;;  %v651_v45 = vld [vmem:[#allocation7 + $0x18] sm:$0xff] }
  0x31   :  { %394 = vmatpush.msrb.mxu3 %v393_v49  ;;  %321 = vmatpush.msrb.mxu2 %v1267_v59  ;;  %v435_v46 = vand.u32 4294901760, %v434_v40 }
  0x32   :  { %507 = vmatpush.msra.mxu1 %v1219_v21  ;;  %465 = vmatpush.msra.mxu0 %v1276_v63 }
  0x33   :  { %400 = vmatpush.msrb.mxu3 %v399_v9  ;;  %323 = vmatpush.msrb.mxu2 %v1278_v0  ;;  %v654_v9 = vld [vmem:[#allocation7 + $0x30] sm:$0xff] }
  0x34   :  { %509 = vmatpush.msra.mxu1 %v1259_v52  ;;  %468 = vmatpush.msra.mxu0 %v1281_v2  ;;  %v657_v2 = vld [vmem:[#allocation7 + $0x48] sm:$0xff]  ;;  %v1552_v35 = vand.u32 4294901760, %v654_v9 }
  0x35   :  { %406 = vmatpush.msrb.mxu3 %v405_v1  ;;  %325 = vmatpush.msrb.mxu2 %v1286_v7  ;;  %v653_v1 = vld [vmem:[#allocation7 + $0x28] sm:$0xff] }
  0x36   :  { %511 = vmatpush.msra.mxu1 %v1261_v53  ;;  %471 = vmatpush.msra.mxu0 %v1284_v6 }
  0x37   :  { %412 = vmatpush.msrb.mxu3 %v411_v30  ;;  %327 = vmatpush.msrb.mxu2 %v1292_v13  ;;  %v652_v30 = vld [vmem:[#allocation7 + $0x20] sm:$0xff] }
  0x38   :  { %513 = vmatpush.msra.mxu1 %v1263_v54  ;;  %474 = vmatpush.msra.mxu0 %v1298_v15 }
  0x39   :  { %418 = vmatpush.msrb.mxu3 %v417_v34  ;;  %329 = vmatpush.msrb.mxu2 %v1332_v38 }
  0x3a   :  { %515 = vmatpush.msra.mxu1 %v1265_v58  ;;  %477 = vmatpush.msra.mxu0 %v1315_v25 }
  0x3b   :  { %424 = vmatpush.msrb.mxu3 %v423_v3  ;;  %331 = vmatpush.msrb.mxu2 %v1334_v39 }
  0x3c   :  { %517 = vmatpush.msra.mxu1 %v1267_v59  ;;  %480 = vmatpush.msra.mxu0 %v1319_v33 }
  0x3d   :  { %430 = vmatpush.msrb.mxu3 %v429_v41  ;;  %333 = vmatpush.msrb.mxu2 %v1338_v43  ;;  %v1557_v41 = vand.u32 4294901760, %v653_v1 }
  0x3e   :  { %519 = vmatpush.msra.mxu1 %v1278_v0  ;;  %483 = vmatpush.msra.mxu0 %v1343_v44 }
  0x3f   :  { %436 = vmatpush.msrb.mxu3 %v435_v46  ;;  %335 = vmatpush.msrb.mxu2 %v1353_v5 }
  0x40   :  { %521 = vmatpush.msra.mxu1 %v1286_v7  ;;  %486 = vmatpush.msra.mxu0 %v1351_v48 }
  0x41   :  { %442 = vmatpush.msrb.mxu3 %v441_v47  ;;  %337 = vmatpush.msrb.mxu2 %v1365_v56 }
  0x42   :  { %523 = vmatpush.msra.mxu1 %v1292_v13  ;;  %489 = vmatpush.msra.mxu0 %v1363_v55  ;;  %v656_v55 = vld [vmem:[#allocation7 + $0x40] sm:$0xff] }
  0x43   :  { %611 = vmatpush.msra.mxu3 %v1198_v11  ;;  %544 = vmatpush.msra.mxu2 %v349_v27  ;;  %v1025_v11 = vld [vmem:[%s1692_s2] ss:$0 sm:$0xff]  ;;  %v662_v27 = vld [vmem:[#allocation7 + $0x70] sm:$0xff] }
  0x44   :  { %525 = vmatpush.msra.mxu1 %v1332_v38  ;;  %492 = vmatpush.msra.mxu0 %v1374_v60 }
  0x45   :  { %613 = vmatpush.msra.mxu3 %v1217_v20  ;;  %548 = vmatpush.msra.mxu2 %v355_v36 }
  0x46   :  { %527 = vmatpush.msra.mxu1 %v1334_v39  ;;  %495 = vmatpush.msra.mxu0 %v1384_v24 }
  0x47   :  { %615 = vmatpush.msra.mxu3 %v1219_v21  ;;  %552 = vmatpush.msra.mxu2 %v361_v37  ;;  %v663_v21 = vld [vmem:[#allocation7 + $0x78] sm:$0xff] }
  0x48   :  { %529 = vmatpush.msra.mxu1 %v1338_v43  ;;  %v1486_v37 = vand.u32 4294901760, %v663_v21 }
  0x49   :  { %617 = vmatpush.msra.mxu3 %v1259_v52  ;;  %556 = vmatpush.msra.mxu2 %v367_v8  ;;  %v1488_v52 = vand.u32 4294901760, %v662_v27 }
  0x4a   :  { %531 = vmatpush.msra.mxu1 %v1353_v5  ;;  %669 = vmatpush.msrb.mxu0 %v1486_v37 }
  0x4b   :  { %619 = vmatpush.msra.mxu3 %v1261_v53  ;;  %560 = vmatpush.msra.mxu2 %v373_v10  ;;  %v1490_v53 = vand.u32 4294901760, %v661_v28  ;;  %v1502_v8 = vsub.f32 %v662_v27, %v1488_v52 }
  0x4c   :  { %533 = vmatpush.msra.mxu1 %v1365_v56  ;;  %671 = vmatpush.msrb.mxu0 %v1488_v52 }
  0x4d   :  { %621 = vmatpush.msra.mxu3 %v1263_v54  ;;  %564 = vmatpush.msra.mxu2 %v379_v12  ;;  %v660_v54 = vld [vmem:[#allocation7 + $0x60] sm:$0xff]  ;;  %v1505_v10 = vsub.f32 %v661_v28, %v1490_v53  ;;  %v1508_v12 = vand.u32 4294901760, %v657_v2 }
  0x4e   :  { %v1492_v62 = vand.u32 4294901760, %v660_v54  ;;  %673 = vmatpush.msrb.mxu0 %v1490_v53 }
  0x4f   :  { %623 = vmatpush.msra.mxu3 %v1265_v58  ;;  %568 = vmatpush.msra.mxu2 %v385_v14  ;;  %v659_v58 = vld [vmem:[#allocation7 + $0x58] sm:$0xff] }
  0x50   :  { %v1494_v63 = vand.u32 4294901760, %v659_v58  ;;  %v1511_v14 = vsub.f32 %v660_v54, %v1492_v62  ;;  %675 = vmatpush.msrb.mxu0 %v1492_v62  ;;  %v1580_v54 = vand.u32 4294901760, %v651_v45 }
  0x51   :  { %625 = vmatpush.msra.mxu3 %v1267_v59  ;;  %572 = vmatpush.msra.mxu2 %v391_v16  ;;  %v658_v59 = vld [vmem:[#allocation7 + $0x50] sm:$0xff] }
  0x52   :  { %v1514_v15 = vsub.f32 %v659_v58, %v1494_v63  ;;  %677 = vmatpush.msrb.mxu0 %v1494_v63 }
  0x53   :  { %627 = vmatpush.msra.mxu3 %v1278_v0  ;;  %576 = vmatpush.msra.mxu2 %v397_v26  ;;  %v1496_v0 = vand.u32 4294901760, %v658_v59  ;;  %v717_v26 = vand.u32 4294901760, %v1502_v8 }
  0x55   :  { %629 = vmatpush.msra.mxu3 %v1286_v7  ;;  %580 = vmatpush.msra.mxu2 %v403_v42  ;;  %v1499_v7 = vsub.f32 %v663_v21, %v1486_v37  ;;  %v1517_v16 = vsub.f32 %v658_v59, %v1496_v0  ;;  %v729_v42 = vand.u32 4294901760, %v1511_v14  ;;  %v718_v48 = vsub.f32 %v1502_v8, %v717_v26 }
  0x56   :  { %679 = vmatpush.msrb.mxu0 %v1496_v0 }
  0x57   :  { %631 = vmatpush.msra.mxu3 %v1292_v13  ;;  %584 = vmatpush.msra.mxu2 %v409_v4  ;;  %v711_v33 = vand.u32 4294901760, %v1499_v7  ;;  %v1526_v4 = vsub.f32 %v657_v2, %v1508_v12  ;;  %v730_v50 = vsub.f32 %v1511_v14, %v729_v42  ;;  %v719_v60 = vand.u32 4294901760, %v718_v48 }
  0x58   :  { %681 = vmatpush.msrb.mxu0 %v1508_v12  ;;  %v1597_v48 = vsub.f32 %v651_v45, %v1580_v54 }
  0x59   :  { %633 = vmatpush.msra.mxu3 %v1332_v38  ;;  %588 = vmatpush.msra.mxu2 %v415_v51  ;;  %v723_v38 = vand.u32 4294901760, %v1505_v10  ;;  %v712_v44 = vsub.f32 %v1499_v7, %v711_v33  ;;  %v741_v51 = vand.u32 4294901760, %v1517_v16  ;;  %v747_v24 = vand.u32 4294901760, %v1526_v4 }
  0x5a   :  { %v731_v3 = vand.u32 4294901760, %v730_v50 }
  0x5b   :  { %635 = vmatpush.msra.mxu3 %v1334_v39  ;;  %592 = vmatpush.msra.mxu2 %v421_v57  ;;  %v713_v57 = vand.u32 4294901760, %v712_v44  ;;  %v742_v40 = vsub.f32 %v1517_v16, %v741_v51  ;;  %v748_v27 = vsub.f32 %v1526_v4, %v747_v24 }
  0x5d   :  { %637 = vmatpush.msra.mxu3 %v1338_v43  ;;  %596 = vmatpush.msra.mxu2 %v427_v23  ;;  %v735_v43 = vand.u32 4294901760, %v1514_v15  ;;  %v743_v59 = vand.u32 4294901760, %v742_v40  ;;  %v649_v40 = vld [vmem:[#allocation7 + $0x8] sm:$0xff] }
  0x5e   :  { %714 = vmatpush.msrb.mxu1 %v713_v57  ;;  %v783_v57 = vand.u32 4294901760, %v1597_v48 }
  0x5f   :  { %639 = vmatpush.msra.mxu3 %v1353_v5  ;;  %600 = vmatpush.msra.mxu2 %v433_v32  ;;  %v724_v5 = vsub.f32 %v1505_v10, %v723_v38  ;;  %v736_v23 = vsub.f32 %v1514_v15, %v735_v43  ;;  %v1547_v32 = vand.u32 4294901760, %v656_v55 }
  0x60   :  { %720 = vmatpush.msrb.mxu1 %v719_v60 }
  0x61   :  { %641 = vmatpush.msra.mxu3 %v1365_v56  ;;  %604 = vmatpush.msra.mxu2 %v439_v18  ;;  %v655_v56 = vld [vmem:[#allocation7 + $0x38] sm:$0xff]  ;;  %v725_v31 = vand.u32 4294901760, %v724_v5  ;;  %v1560_v46 = vsub.f32 %v656_v55, %v1547_v32  ;;  %v737_v21 = vand.u32 4294901760, %v736_v23  ;;  %v784_v23 = vsub.f32 %v1597_v48, %v783_v57 }
  0x62   :  { %v1550_v34 = vand.u32 4294901760, %v655_v56  ;;  %683 = vmatpush.msrb.mxu0 %v1547_v32 }
  0x63   :  { %726 = vmatpush.msrb.mxu1 %v725_v31  ;;  %v753_v28 = vand.u32 4294901760, %v1560_v46  ;;  %v785_v31 = vand.u32 4294901760, %v784_v23 }
  0x64   :  { %v1563_v47 = vsub.f32 %v655_v56, %v1550_v34  ;;  %685 = vmatpush.msrb.mxu0 %v1550_v34 }
  0x65   :  { %732 = vmatpush.msrb.mxu1 %v731_v3 }
  0x66   :  { %687 = vmatpush.msrb.mxu0 %v1552_v35 }
  0x67   :  { %738 = vmatpush.msrb.mxu1 %v737_v21  ;;  %v648_v21 = vld [vmem:[#allocation7] sm:$0xff] }
  0x68   :  { %689 = vmatpush.msrb.mxu0 %v1557_v41 }
  0x69   :  { %744 = vmatpush.msrb.mxu1 %v743_v59  ;;  %v698_v59 = vand.u32 4294901760, %v648_v21 }
  0x9d   :  { %v126_v19 = vpop.f32.mrf.mxu0 }
  0x9e   :  { %v127_v20 = vadd.f32 %v1025_v11, %v126_v19  ;;  %v1567_v11 = vsub.f32 %v654_v9, %v1552_v35  ;;  %v1569_v19 = vand.u32 4294901760, %v652_v30 }
  0xa0   :  { %v765_v2 = vand.u32 4294901760, %v1567_v11  ;;  %691 = vmatpush.msrb.mxu0 %v1569_v19 }
  0xa1   :  { %v167_v29 = vpop.f32.mrf.mxu1  ;;  %v224_v6 = vpop.f32.mrf.mxu3 }
  0xa2   :  { %v197_v36 = vpop.f32.mrf.mxu2  ;;  %v168_v61 = vadd.f32 %v167_v29, %v127_v20  ;;  %v759_v29 = vand.u32 4294901760, %v1563_v47  ;;  %v766_v50 = vsub.f32 %v1567_v11, %v765_v2  ;;  %693 = vmatpush.msrb.mxu0 %v1580_v54 }
  0xa4   :  { %v198_v13 = vadd.f32 %v197_v36, %v168_v61  ;;  %v1578_v36 = vsub.f32 %v653_v1, %v1557_v41  ;;  %v754_v61 = vsub.f32 %v1560_v46, %v753_v28  ;;  %v767_v60 = vand.u32 4294901760, %v766_v50 }
  0xa5   :  { %v257_v25 = vpop.f32.mrf.mxu0 }
  0xa6   :  { %v225_v39 = vadd.f32 %v224_v6, %v198_v13  ;;  %v1588_v6 = vsub.f32 %v652_v30, %v1569_v19  ;;  %v771_v44 = vand.u32 4294901760, %v1578_v36 }
  0xa8   :  { %v258_v49 = vadd.f32 %v257_v25, %v225_v39  ;;  %v749_v25 = vand.u32 4294901760, %v748_v27  ;;  %v760_v39 = vsub.f32 %v1563_v47, %v759_v29  ;;  %v777_v55 = vand.u32 4294901760, %v1588_v6 }
  0xa9   :  { %v282_v17 = vpop.f32.mrf.mxu1 }
  0xaa   :  { %v283_v22 = vadd.f32 %v282_v17, %v258_v49  ;;  %v755_v49 = vand.u32 4294901760, %v754_v61  ;;  %750 = vmatpush.msrb.mxu1 %v749_v25  ;;  %v761_v9 = vand.u32 4294901760, %v760_v39  ;;  %v772_v17 = vsub.f32 %v1578_v36, %v771_v44 }
  0xab   :  { %v778_v1 = vsub.f32 %v1588_v6, %v777_v55  ;;  %v800_v25 = vsub.f32 %v648_v21, %v698_v59 }
  0xac   :  { %v285_v18 = vmax.f32 %v283_v22, 0.0  ;;  %756 = vmatpush.msrb.mxu1 %v755_v49  ;;  %v773_v22 = vand.u32 4294901760, %v772_v17 }
  0xad   :  { %v779_v30 = vand.u32 4294901760, %v778_v1  ;;  %v801_v49 = vand.u32 4294901760, %v800_v25 }
  0xae   :  { %v338_v20 = vand.u32 4294901760, %v285_v18  ;;  %762 = vmatpush.msrb.mxu1 %v761_v9 }
  0xb0   :  { %v339_v58 = vsub.f32 %v285_v18, %v338_v20  ;;  %444 = vmatmul.f32.vlgmr.msrb.gmra.mxu3 %v338_v20  ;;  %768 = vmatpush.msrb.mxu1 %v767_v60  ;;  %v650_v18 = vld [vmem:[#allocation7 + $0x10] sm:$0xff] }
  0xb1   :  { %865 = vmatpush.msrb.mxu3 %v1486_v37  ;;  %v694_v3 = vand.u32 4294901760, %v650_v18 }
  0xb2   :  { %498 = vmatmul.f32.vlgmr.msra.gmra.mxu0 %v339_v58  ;;  %v340_v13 = vand.u32 4294901760, %v339_v58  ;;  %774 = vmatpush.msrb.mxu1 %v773_v22 }
  0xb3   :  { %867 = vmatpush.msrb.mxu3 %v1488_v52  ;;  %v788_v45 = vsub.f32 %v650_v18, %v694_v3  ;;  %695 = vmatpush.msrb.mxu0 %v694_v3 }
  0xb4   :  { %537 = vmatmul.f32.vlgmr.msra.gmra.mxu1 %v340_v13  ;;  %v341_v5 = vsub.f32 %v339_v58, %v340_v13 }
  0xb5   :  { %869 = vmatpush.msrb.mxu3 %v1490_v53  ;;  %780 = vmatpush.msrb.mxu1 %v779_v30  ;;  %v789_v27 = vand.u32 4294901760, %v788_v45 }
  0xb6   :  { %v342_v56 = vand.u32 4294901760, %v341_v5 }
  0xb7   :  { %871 = vmatpush.msrb.mxu3 %v1492_v62  ;;  %786 = vmatpush.msrb.mxu1 %v785_v31  ;;  %v790_v61 = vsub.f32 %v788_v45, %v789_v27 }
  0xb8   :  { %343 = vmatmul.f32.vlgmr.msrb.gmra.mxu2 %v342_v56  ;;  %643 = vmatmul.f32.vlgmr.msra.gmra.mxu3 %v338_v20  ;;  %v802_v56 = vsub.f32 %v800_v25, %v801_v49 }
  0xb9   :  { %812 = vmatpush.msrb.mxu2 %v1499_v7  ;;  %873 = vmatpush.msrb.mxu3 %v1494_v63  ;;  %v791_v39 = vand.u32 4294901760, %v790_v61 }
  0xba   :  { %v803_v9 = vand.u32 4294901760, %v802_v56 }
  0xbb   :  { %815 = vmatpush.msrb.mxu2 %v1502_v8  ;;  %875 = vmatpush.msrb.mxu3 %v1496_v0 }
  0xbc   :  { %792 = vmatpush.msrb.mxu1 %v791_v39 }
  0xbd   :  { %818 = vmatpush.msrb.mxu2 %v1505_v10  ;;  %877 = vmatpush.msrb.mxu3 %v1508_v12 }
  0xbf   :  { %821 = vmatpush.msrb.mxu2 %v1511_v14  ;;  %879 = vmatpush.msrb.mxu3 %v1547_v32 }
  0xc0   :  { %606 = vmatmul.f32.vlgmr.msra.gmra.mxu2 %v338_v20  ;;  %v696_v20 = vand.u32 4294901760, %v649_v40 }
  0xc1   :  { %824 = vmatpush.msrb.mxu2 %v1514_v15  ;;  %881 = vmatpush.msrb.mxu3 %v1550_v34 }
  0xc2   :  { %v794_v58 = vsub.f32 %v649_v40, %v696_v20  ;;  %697 = vmatpush.msrb.mxu0 %v696_v20 }
  0xc3   :  { %827 = vmatpush.msrb.mxu2 %v1517_v16  ;;  %883 = vmatpush.msrb.mxu3 %v1552_v35 }
  0xc4   :  { %v795_v13 = vand.u32 4294901760, %v794_v58  ;;  %699 = vmatpush.msrb.mxu0 %v698_v59 }
  0xc5   :  { %830 = vmatpush.msrb.mxu2 %v1526_v4  ;;  %885 = vmatpush.msrb.mxu3 %v1557_v41 }
  0xc6   :  { %906 = vmatpush.msra.mxu0 %v711_v33  ;;  %v796_v5 = vsub.f32 %v794_v58, %v795_v13 }
  0xc7   :  { %833 = vmatpush.msrb.mxu2 %v1560_v46  ;;  %887 = vmatpush.msrb.mxu3 %v1569_v19 }
  0xc8   :  { %910 = vmatpush.msra.mxu0 %v717_v26  ;;  %v797_v50 = vand.u32 4294901760, %v796_v5 }
  0xc9   :  { %836 = vmatpush.msrb.mxu2 %v1563_v47  ;;  %889 = vmatpush.msrb.mxu3 %v1580_v54 }
  0xca   :  { %914 = vmatpush.msra.mxu0 %v723_v38  ;;  %798 = vmatpush.msrb.mxu1 %v797_v50 }
  0xcb   :  { %839 = vmatpush.msrb.mxu2 %v1567_v11  ;;  %891 = vmatpush.msrb.mxu3 %v694_v3 }
  0xcc   :  { %918 = vmatpush.msra.mxu0 %v729_v42  ;;  %804 = vmatpush.msrb.mxu1 %v803_v9 }
  0xcd   :  { %842 = vmatpush.msrb.mxu2 %v1578_v36  ;;  %893 = vmatpush.msrb.mxu3 %v696_v20 }
  0xce   :  { %973 = vmatpush.msra.mxu1 %v1486_v37  ;;  %922 = vmatpush.msra.mxu0 %v735_v43  ;;  %v1026_v37 = vld [vmem:[%s1694_s4] ss:$0 sm:$0xff] }
  0xcf   :  { %845 = vmatpush.msrb.mxu2 %v1588_v6  ;;  %895 = vmatpush.msrb.mxu3 %v698_v59 }
  0xd0   :  { %975 = vmatpush.msra.mxu1 %v1488_v52  ;;  %926 = vmatpush.msra.mxu0 %v741_v51  ;;  %v1027_v51 = vld [vmem:[%s1696_s6] ss:$0 sm:$0xff] }
  0xd1   :  { %848 = vmatpush.msrb.mxu2 %v1597_v48 }
  0xd2   :  { %977 = vmatpush.msra.mxu1 %v1490_v53  ;;  %930 = vmatpush.msra.mxu0 %v747_v24 }
  0xd3   :  { %851 = vmatpush.msrb.mxu2 %v788_v45 }
  0xd4   :  { %979 = vmatpush.msra.mxu1 %v1492_v62  ;;  %934 = vmatpush.msra.mxu0 %v753_v28 }
  0xd5   :  { %854 = vmatpush.msrb.mxu2 %v794_v58 }
  0xd6   :  { %981 = vmatpush.msra.mxu1 %v1494_v63  ;;  %938 = vmatpush.msra.mxu0 %v759_v29 }
  0xd7   :  { %857 = vmatpush.msrb.mxu2 %v800_v25 }
  0xd8   :  { %983 = vmatpush.msra.mxu1 %v1496_v0  ;;  %942 = vmatpush.msra.mxu0 %v765_v2 }
  0xda   :  { %985 = vmatpush.msra.mxu1 %v1508_v12  ;;  %946 = vmatpush.msra.mxu0 %v771_v44 }
  0xdc   :  { %987 = vmatpush.msra.mxu1 %v1547_v32  ;;  %950 = vmatpush.msra.mxu0 %v777_v55 }
  0xde   :  { %989 = vmatpush.msra.mxu1 %v1550_v34  ;;  %954 = vmatpush.msra.mxu0 %v783_v57 }
  0xe0   :  { %991 = vmatpush.msra.mxu1 %v1552_v35  ;;  %958 = vmatpush.msra.mxu0 %v789_v27 }
  0xe2   :  { %993 = vmatpush.msra.mxu1 %v1557_v41  ;;  %962 = vmatpush.msra.mxu0 %v795_v13 }
  0xe4   :  { %995 = vmatpush.msra.mxu1 %v1569_v19  ;;  %966 = vmatpush.msra.mxu0 %v801_v49 }
  0xe6   :  { %997 = vmatpush.msra.mxu1 %v1580_v54 }
  0xe8   :  { %999 = vmatpush.msra.mxu1 %v694_v3 }
  0xea   :  { %1001 = vmatpush.msra.mxu1 %v696_v20 }
  0xec   :  { %1003 = vmatpush.msra.mxu1 %v698_v59 }
 0x12f   :  { %v499_v0 = vpop.f32.mrf.mxu0 }
 0x131   :  { %v538_v8 = vpop.f32.mrf.mxu1 }
 0x133   :  { %v445_v52 = vpop.f32.mrf.mxu3 }
 0x13b   :  { %v344_v53 = vpop.f32.mrf.mxu2  ;;  %v644_v15 = vpop.f32.mrf.mxu3 }
 0x13c   :  { %v345_v62 = vadd.f32 %v1026_v37, %v344_v53 }
 0x13e   :  { %v446_v63 = vadd.f32 %v445_v52, %v345_v62 }
 0x140   :  { %v500_v7 = vadd.f32 %v499_v0, %v446_v63 }
 0x142   :  { %v539_v10 = vadd.f32 %v538_v8, %v500_v7 }
 0x143   :  { %v607_v12 = vpop.f32.mrf.mxu2 }
 0x144   :  { %v608_v14 = vadd.f32 %v607_v12, %v539_v10 }
 0x146   :  { %v645_v16 = vadd.f32 %v644_v15, %v608_v14 }
 0x148   :  { %v647_v33 = vmax.f32 %v645_v16, 0.0 }
 0x14a   :  { %v700_v26 = vand.u32 4294901760, %v647_v33 }
 0x14c   :  { %v701_v38 = vsub.f32 %v647_v33, %v700_v26  ;;  %806 = vmatmul.f32.vlgmr.msrb.gmra.mxu1 %v700_v26 }
 0x14e   :  { %860 = vmatmul.f32.vlgmr.msrb.gmra.mxu2 %v701_v38  ;;  %v702_v42 = vand.u32 4294901760, %v701_v38 }
 0x150   :  { %899 = vmatmul.f32.vlgmr.msrb.gmra.mxu3 %v702_v42  ;;  %v703_v43 = vsub.f32 %v701_v38, %v702_v42 }
 0x152   :  { %v704_v4 = vand.u32 4294901760, %v703_v43 }
 0x154   :  { %705 = vmatmul.f32.vlgmr.msrb.gmra.mxu0 %v704_v4  ;;  %1005 = vmatmul.f32.vlgmr.msra.gmra.mxu1 %v700_v26 }
 0x15c   :  { %968 = vmatmul.f32.vlgmr.msra.gmra.mxu0 %v700_v26 }
 0x1c9   :  { %v807_v24 = vpop.f32.mrf.mxu1 }
 0x1d1   :  { %v706_v32 = vpop.f32.mrf.mxu0  ;;  %v861_v41 = vpop.f32.mrf.mxu2 }
 0x1d2   :  { %v707_v34 = vadd.f32 %v1027_v51, %v706_v32  ;;  %v1006_v29 = vpop.f32.mrf.mxu1 }
 0x1d3   :  { %v900_v47 = vpop.f32.mrf.mxu3 }
 0x1d4   :  { %v808_v35 = vadd.f32 %v807_v24, %v707_v34 }
 0x1d6   :  { %v862_v46 = vadd.f32 %v861_v41, %v808_v35 }
 0x1d8   :  { %v901_v11 = vadd.f32 %v900_v47, %v862_v46 }
 0x1d9   :  { %v969_v19 = vpop.f32.mrf.mxu0 }
 0x1da   :  { %v970_v28 = vadd.f32 %v969_v19, %v901_v11 }
 0x1dc   :  { %v1007_v36 = vadd.f32 %v1006_v29, %v970_v28 }
 0x1de   :  { %1028 = vtanh.f32 %v1007_v36 }
 0x1e4   :  { %v1029_v54 = vpop.eup %1028 }
 0x1e5   :  { %1011 = vst.msk [vmem:[%s1697_s7] sm:$0xff] %vm1010_vm1, %v1029_v54 }
 0x1e6   :  { %1016 = vsyncpa [#allocation3], 1 }
 0x1e7   :  { %1017 = vsyncpa [#allocation5], 1 }
 0x1e8   :  { %1018 = vsyncpa [#allocation8], 1 }

</bundles_post_ra>
